<compile_context>
chip_gen: v7x
topology: tpu7x:2x2x1
jax: 0.10.0
libtpu: 0.0.40
codegen_flags: <defaults>
</compile_context>

<pallas_src>
import jax
import jax.numpy as jnp
from jax.experimental import pallas as pl
from jax.experimental.pallas import tpu as pltpu


def _pad128(n: int) -> int:
    return ((n + 127) // 128) * 128


def _make_kernel(c_enc: int, lane_aligned_seam: bool):
    """Build the per-tile kernel, specialized on the (static) channel seam."""
    if lane_aligned_seam:
        # Seam sits on a 128-lane boundary: two plain full-width slab stores,
        # no cross-lane shuffles and no masked seam stores.
        def kernel(data_ref, x_ref, o_ref):
            o_ref[:, :c_enc] = data_ref[...].astype(o_ref.dtype)
            o_ref[:, c_enc:] = x_ref[...].astype(o_ref.dtype)
    else:
        # Unaligned seam: build each output vreg once with a concat and store
        # it with a single store per vreg (instead of two masked partials).
        def kernel(data_ref, x_ref, o_ref):
            o_ref[...] = jnp.concatenate(
                [data_ref[...].astype(o_ref.dtype),
                 x_ref[...].astype(o_ref.dtype)],
                axis=-1,
            )
    return kernel


def _pick_tile_rows(rows: int, per_row_padded_bytes: int) -> int:
    """Row-tile size.

    Keeps the double-buffered (data + x + out) live set <= ~8 MiB of VMEM
    using lane-padded accounting, caps tiles at 1024 rows (already at the HBM
    roofline), and -- when the input is big enough -- guarantees at least two
    grid steps so v7x's two TensorCores can both be used.
    """
    budget = 8 << 20  # total double-buffered VMEM budget (v5e default is 16 MiB)
    t = budget // max(2 * per_row_padded_bytes, 1)
    t = min(t, 1024)
    if t >= 32:
        t = (t // 32) * 32          # sublane-legal for f32 / bf16 / int8 alike
    else:
        t = max(8, (t // 8) * 8)    # very wide channels: fall back to 8-row tiles
    if t >= rows:
        if rows >= 64:
            # A single full-extent tile would leave one v7x TC idle; split the
            # "parallel" axis into >= 2 sublane-legal tiles.
            return max(32, (rows // 2 // 32) * 32)
        return rows                 # tiny input: full extent is always legal
    return t


@jax.jit
def extend_encoding(data, x):
    """Pallas equivalent of ExtendEncoding(_add_channel, data).forward(x),
    i.e. torch.cat([data, x], dim=2)."""
    assert data.ndim == 3 and x.ndim == 3
    assert data.shape[0] == x.shape[0] and data.shape[1] == x.shape[1], (
        "data and x must agree on batch and sequence dims (torch.cat dim=2)")
    B, S, c_enc = data.shape
    c_x = x.shape[2]
    c_out = c_enc + c_x
    out_dtype = jnp.result_type(data.dtype, x.dtype)

    # Fuse batch & sequence: free reshape, gives a long row axis to tile over.
    rows = B * S
    data2 = data.reshape(rows, c_enc)
    x2 = x.reshape(rows, c_x)

    # Lane-padded VMEM accounting (last dim rounds up to 128 lanes) for all
    # three resident tiles; double-buffering is applied in _pick_tile_rows.
    per_row_padded_bytes = (
        _pad128(c_enc) * jnp.dtype(data.dtype).itemsize
        + _pad128(c_x) * jnp.dtype(x.dtype).itemsize
        + _pad128(c_out) * jnp.dtype(out_dtype).itemsize)
    tile_rows = _pick_tile_rows(rows, per_row_padded_bytes)
    grid = (pl.cdiv(rows, tile_rows),)

    kernel = _make_kernel(c_enc, lane_aligned_seam=(c_enc % 128 == 0))

    out = pl.pallas_call(
        kernel,
        out_shape=jax.ShapeDtypeStruct((rows, c_out), out_dtype),
        grid=grid,
        in_specs=[
            pl.BlockSpec((tile_rows, c_enc), lambda r: (r, 0)),
            pl.BlockSpec((tile_rows, c_x), lambda r: (r, 0)),
        ],
        out_specs=pl.BlockSpec((tile_rows, c_out), lambda r: (r, 0)),
        compiler_params=pltpu.CompilerParams(
            dimension_semantics=("parallel",)),
    )(data2, x2)

    return out.reshape(B, S, c_out)


if __name__ == "__main__":
    key = jax.random.PRNGKey(0)
    k_d1, k_x1, k_d2, k_x2, k_d3, k_x3, k_d4, k_x4 = jax.random.split(key, 8)

    # Small shapes consistent with the module: (batch, seq, channels), dim=2.
    B, S, C_ENC, C_X = 2, 8, 16, 32
    data = jax.random.normal(k_d1, (B, S, C_ENC), dtype=jnp.float32)
    x = jax.random.normal(k_x1, (B, S, C_X), dtype=jnp.float32)
    out = jax.block_until_ready(extend_encoding(data, x))
    ref = jnp.concatenate([data, x], axis=2)
    assert out.shape == (B, S, C_ENC + C_X), out.shape
    assert out.dtype == ref.dtype
    assert jnp.array_equal(out, ref), "mismatch vs jnp.concatenate reference"

    # Mixed dtypes: promotion/cast happens inside the kernel (no wrapper astype).
    data_b = jax.random.normal(k_d2, (B, S, C_ENC), dtype=jnp.float32)
    x_b = jax.random.normal(k_x2, (B, S, C_X), dtype=jnp.bfloat16)
    out_b = jax.block_until_ready(extend_encoding(data_b, x_b))
    ref_b = jnp.concatenate([data_b, x_b.astype(jnp.float32)], axis=2)
    assert out_b.dtype == jnp.float32
    assert jnp.array_equal(out_b, ref_b), "mismatch in mixed-dtype case"

    # Multi-tile + PARTIAL last tile: 3*700 = 2100 fused rows -> tiles of 1024,
    # the last tile covers only 52 rows (exercises out-of-bounds masking).
    B2, S2 = 3, 700
    data_c = jax.random.normal(k_d3, (B2, S2, C_ENC), dtype=jnp.float32)
    x_c = jax.random.normal(k_x3, (B2, S2, C_X), dtype=jnp.float32)
    out_c = jax.block_until_ready(extend_encoding(data_c, x_c))
    ref_c = jnp.concatenate([data_c, x_c], axis=2)
    assert jnp.array_equal(out_c, ref_c), "mismatch in partial-tile case"

    # Lane-aligned seam (c_enc % 128 == 0): exercises the two-slab-store kernel
    # and the forced >=2-grid-step split (128 rows -> two 64-row tiles).
    B3, S3, C_ENC3, C_X3 = 2, 64, 128, 256
    data_d = jax.random.normal(k_d4, (B3, S3, C_ENC3), dtype=jnp.float32)
    x_d = jax.random.normal(k_x4, (B3, S3, C_X3), dtype=jnp.float32)
    out_d = jax.block_until_ready(extend_encoding(data_d, x_d))
    ref_d = jnp.concatenate([data_d, x_d], axis=2)
    assert jnp.array_equal(out_d, ref_d), "mismatch in lane-aligned case"

    print("KERNEL_OK")
</pallas_src>

<mosaic_0001>
module attributes {stable_mosaic.version = 11 : i64} {
  func.func @kernel(%arg0: i32, %arg1: memref<16x16xf32, #tpu.memory_space<vmem>>, %arg2: memref<16x32xf32, #tpu.memory_space<vmem>>, %arg3: memref<16x48xf32, #tpu.memory_space<vmem>>) attributes {dimension_semantics = [#tpu.dimension_semantics<parallel>], iteration_bounds = array<i64: 1>, scalar_prefetch = 0 : i64, scratch_operands = 0 : i64, tpu.core_type = #tpu.core_type<tc>, window_params = [{transform_indices = @transform_0, window_bounds = array<i64: 16, 16>}, {transform_indices = @transform_1, window_bounds = array<i64: 16, 32>}, {transform_indices = @transform_2, window_bounds = array<i64: 16, 48>}]} {
    %c0 = arith.constant 0 : index
    %c0_0 = arith.constant 0 : index
    %0 = vector.load %arg1[%c0, %c0_0] : memref<16x16xf32, #tpu.memory_space<vmem>>, vector<16x16xf32>
    %c0_1 = arith.constant 0 : index
    %c0_2 = arith.constant 0 : index
    %1 = vector.load %arg2[%c0_1, %c0_2] : memref<16x32xf32, #tpu.memory_space<vmem>>, vector<16x32xf32>
    %2 = tpu.concatenate %0, %1 in 1 : vector<16x16xf32>, vector<16x32xf32> -> vector<16x48xf32>
    %c0_3 = arith.constant 0 : index
    %c0_4 = arith.constant 0 : index
    %3 = vector.load %arg3[%c0_3, %c0_4] : memref<16x48xf32, #tpu.memory_space<vmem>>, vector<16x48xf32>
    tpu.vector_store %arg3[%c0_3, %c0_4], %2 {strides = array<i32>} : memref<16x48xf32, #tpu.memory_space<vmem>>, vector<16x48xf32>,
    return
  }
  func.func @transform_0(%arg0: i32) -> (i32, i32) {
    %c0_i32 = arith.constant 0 : i32
    %c0_i32_0 = arith.constant 0 : i32
    return %arg0, %c0_i32 : i32, i32
  }
  func.func @transform_1(%arg0: i32) -> (i32, i32) {
    %c0_i32 = arith.constant 0 : i32
    %c0_i32_0 = arith.constant 0 : i32
    return %arg0, %c0_i32 : i32, i32
  }
  func.func @transform_2(%arg0: i32) -> (i32, i32) {
    %c0_i32 = arith.constant 0 : i32
    %c0_i32_0 = arith.constant 0 : i32
    return %arg0, %c0_i32 : i32, i32
  }
}

</mosaic_0001>

<bundles_post_ra>
// kernel: extend_encoding.1
= control target key start
LH: loop header
LB: loop body
LE: loop exit
PB: predicated region body
PF: predicated region fallthrough
CT: control target
= control target key end

     0   :  { %7 = vsyncpa [#allocation3], 0  ;;  %s220_s0 = inlined_call_operand.hbm [shape: f32[16,16], index: 0, kind: input, shape index: {}]   ;;  %s221_s1 = inlined_call_operand.hbm [shape: f32[16,32], index: 1, kind: input, shape index: {}]   ;;  %s222_s2 = inlined_call_operand.hbm [shape: f32[16,48], index: 2, kind: output, shape index: {}]  }
   0x1   :  { %8 = vsyncpa [#allocation6], 0 }
   0x2   :  { %9 = vsyncpa [#allocation4], 0  ;;  %s154_s9 = smov [#allocation2]   ;;  %s82_s13 = scalar_lea.hbm %s220_s0, 256 }
   0x3   :  { %s15_s10 = sshll.u32 %s154_s9, 4  ;;  %p83_p0 = scmp.ne.s32.totalorder %s220_s0, %s82_s13  ;;  %s16_s10 = int_to_ptr.vmem [resolvable:$true] %s15_s10 }
   0x4   :  { %p86_p1 = scmp.lt.u32.totalorder %s82_s13, %s220_s0 }
   0x6   :  { %p88_p2 = pnand %p86_p1, %p83_p0 }
   0x8   :  { %91 = shalt.err (!%p88_p2)
}
   0x9   :  { %s92_s18 = scalar_lea.vmem %s16_s10, 256  ;;  %p97_p4 = scmp.lt.s32.totalorder %s16_s10, %s16_s10 }
   0xa   :  { %p93_p3 = scmp.ne.s32.totalorder %s16_s10, %s92_s18  ;;  %p98_p5 = scmp.lt.s32.totalorder %s92_s18, %s92_s18 }
   0xc   :  { %p99_p6 = por %p98_p5, %p97_p4 }
   0xe   :  { %p100_p7 = pnand %p99_p6, %p93_p3 }
  0x10   :  { %103 = shalt.err (!%p100_p7)
}
  0x11   :  { %s155_s19 = smov 128   ;;  %s156_s20 = smov 8  }
  0x12   :  { %21 = dma.hbm_to_vmem [thread:$0]  %s220_s0, 256, %s16_s10, [#allocation3], %s155_s19, %s155_s19, %s156_s20  }
  0x13   :  { %s157_s23 = smov [#allocation5]   ;;  %s104_s27 = scalar_lea.hbm %s221_s1, 256 }
  0x14   :  { %s27_s24 = sshll.u32 %s157_s23, 4  ;;  %p105_p8 = scmp.ne.s32.totalorder %s221_s1, %s104_s27  ;;  %s28_s24 = int_to_ptr.vmem [resolvable:$true] %s27_s24 }
  0x15   :  { %p108_p9 = scmp.lt.u32.totalorder %s104_s27, %s221_s1 }
  0x17   :  { %p110_p10 = pnand %p108_p9, %p105_p8 }
  0x19   :  { %113 = shalt.err (!%p110_p10)
}
  0x1a   :  { %s114_s4 = scalar_lea.vmem %s28_s24, 256  ;;  %p119_p12 = scmp.lt.s32.totalorder %s28_s24, %s28_s24 }
  0x1b   :  { %p115_p11 = scmp.ne.s32.totalorder %s28_s24, %s114_s4  ;;  %p120_p13 = scmp.lt.s32.totalorder %s114_s4, %s114_s4 }
  0x1d   :  { %p121_p0 = por %p120_p13, %p119_p12 }
  0x1f   :  { %p122_p1 = pnand %p121_p0, %p115_p11 }
  0x21   :  { %125 = shalt.err (!%p122_p1)
}
  0x22   :  { %33 = dma.hbm_to_vmem [thread:$0]  %s221_s1, 256, %s28_s24, [#allocation6], %s155_s19, %s155_s19, %s156_s20  }
  0x23   :  { %148 = dma.done.wait [#allocation3], 256  }
  0x24   :  { %149 = vsyncadd [#allocation3], 4294967040 }
  0x25   :  { %150 = dma.done.wait [#allocation6], 256  }
  0x26   :  { %151 = vsyncadd [#allocation6], 4294967040  ;;  %v42_v0 = vld [vmem:[#allocation5] sm:$0xff]  ;;  %s158_s6 = smov 16   ;;  %v43_v1 = vld [vmem:[#allocation5 + $0x8] sm:$0xff]  ;;  %vm52_vm0 = vcmask 130048  }
  0x27   :  { %46 = vrot.lane.b32.xlu0 %v42_v0, %s158_s6  ;;  %v40_v2 = vld [vmem:[#allocation2] sm:$0xff]  ;;  %vm55_vm1 = vcmask 392192   ;;  %s159_s7 = smov [#allocation7]   ;;  %v41_v5 = vld [vmem:[#allocation2 + $0x8] sm:$0xff] }
  0x28   :  { %s63_s8 = sshll.u32 %s159_s7, 4  ;;  %s64_s8 = int_to_ptr.vmem [resolvable:$true] %s63_s8 }
  0x29   :  { %s126_s1 = scalar_lea.vmem %s64_s8, 256  ;;  %p131_p3 = scmp.lt.s32.totalorder %s64_s8, %s64_s8 }
  0x2a   :  { %p127_p2 = scmp.ne.s32.totalorder %s64_s8, %s126_s1  ;;  %p132_p4 = scmp.lt.s32.totalorder %s126_s1, %s126_s1 }
  0x2b   :  { %48 = vrot.lane.b32.xlu0 %v43_v1, %s158_s6 }
  0x2c   :  { %p133_p5 = por %p132_p4, %p131_p3 }
  0x2e   :  { %p134_p6 = pnand %p133_p5, %p127_p2 }
  0x99   :  { %v47_v3 = vpop.permute.xlu0 %46 }
  0x9a   :  { %v53_v4 = vsel %vm52_vm0, %v40_v2, %v47_v3 }
  0x9b   :  { %56 = vst.msk [vmem:[#allocation7] sm:$0xff] %vm55_vm1, %v53_v4 }
  0x9d   :  { %v49_v6 = vpop.permute.xlu0 %48 }
  0x9e   :  { %v54_v7 = vsel %vm52_vm0, %v41_v5, %v49_v6 }
  0x9f   :  { %57 = vst.msk [vmem:[#allocation7 + $0x8] sm:$0xff] %vm55_vm1, %v54_v7 }
  0xa0   :  { %137 = shalt.err (!%p134_p6)
}
  0xa1   :  { %s138_s11 = scalar_lea.hbm %s222_s2, 256 }
  0xa2   :  { %p139_p7 = scmp.ne.s32.totalorder %s222_s2, %s138_s11  ;;  %p142_p8 = scmp.lt.u32.totalorder %s138_s11, %s222_s2 }
  0xa4   :  { %p144_p9 = pnand %p142_p8, %p139_p7 }
  0xa6   :  { %147 = shalt.err (!%p144_p9)
}
  0xa7   :  { %69 = dma.vmem_to_hbm [thread:$0]  %s64_s8, 256, %s222_s2, [#allocation4], %s155_s19, %s155_s19, %s156_s20  }
  0xa8   :  { %152 = dma.done.wait [#allocation4], 256  }
  0xa9   :  { %153 = vsyncadd [#allocation4], 4294967040 }
  0xaa   :  { %73 = vsyncpa [#allocation3], 1 }
  0xab   :  { %74 = vsyncpa [#allocation6], 1 }
  0xac   :  { %75 = vsyncpa [#allocation4], 1 }

</bundles_post_ra>
